<compile_context>
chip_gen: v5e
topology: v5e:2x2
jax: 0.10.0
libtpu: 0.0.40
codegen_flags: <defaults>
</compile_context>

<pallas_src>
import functools

import jax
import jax.numpy as jnp
from jax import lax
from jax.experimental import pallas as pl
from jax.experimental.pallas import tpu as pltpu


def _round_up(x, m):
    return -(-x // m) * m


def _patch_embed_kernel(x_ref, w_ref, b_ref, g_ref, beta_ref, o_ref, *, eps, inv_e):
    # x_ref:    (tm, K)  patch vectors (compute dtype, e.g. bf16)
    # w_ref:    (K, E)   conv weight flattened in (C, ph, pw) order
    # b_ref, g_ref, beta_ref: (1, E) f32  (conv bias, LN gamma, LN beta)
    # o_ref:    (tm, E)
    # Strided conv == matmul over flattened patches (MXU, f32 accumulate).
    y = jnp.dot(x_ref[...], w_ref[...], preferred_element_type=jnp.float32)
    y = y + b_ref[...]
    # One-pass LayerNorm statistics in f32: a single sweep produces sum and
    # sum-of-squares; var = E[y^2] - mean^2 (biased, PyTorch semantics).
    s1 = jnp.sum(y, axis=-1, keepdims=True)
    s2 = jnp.sum(y * y, axis=-1, keepdims=True)
    mean = s1 * inv_e
    var = jnp.maximum(s2 * inv_e - mean * mean, 0.0)
    inv_std = lax.rsqrt(var + eps)
    o_ref[...] = ((y - mean) * inv_std * g_ref[...] + beta_ref[...]).astype(o_ref.dtype)
    # TODO(synk): for small embed dims (E < 128) present a lane-dense output
    # block ((tm//r, r*E), r = 128//E) to replace masked vst.msk partial
    # stores; needs a sublane->lane relayout reshape before the store.


def _vmem_capacity_bytes():
    """Physical VMEM per TensorCore (generation-aware) with a conservative
    fallback (v7x: 64 MiB/TC; v5e/v6e: 128 MiB)."""
    try:
        info = pltpu.get_tpu_info()
        cap = int(getattr(info, "vmem_capacity_bytes", 0) or 0)
        if cap > 0:
            return cap
    except Exception:
        pass
    return 64 * 1024 * 1024


def _vmem_need_bytes(tm, K, E, in_bytes, out_bytes):
    """Double-buffered working set + f32 intermediates + internal-scratch
    margin, padded to (8, 128) VMEM tiles."""
    Kp, Ep = _round_up(K, 128), _round_up(E, 128)
    fixed = (2 * _round_up(K, 8) * Ep * in_bytes   # weight (grid-invariant, 2 bufs)
             + 3 * 2 * 8 * Ep * 4                  # bias / gamma / beta
             + (1 << 20))                          # Mosaic internal scratch margin
    return (fixed
            + 2 * tm * Kp * in_bytes               # x tile, double-buffered
            + 2 * tm * Ep * out_bytes              # out tile, double-buffered
            + 2 * tm * Ep * 4)                     # f32 matmul / LN intermediates


def _choose_row_tile(M, K, E, in_bytes, out_bytes, vmem_budget_bytes, tm_max=2048):
    """Largest power-of-two row tile (8..tm_max) whose working set fits the
    generation-aware VMEM budget, then adjusted for megacore balance."""
    tm = tm_max
    while tm > 8 and _vmem_need_bytes(tm, K, E, in_bytes, out_bytes) > vmem_budget_bytes:
        tm //= 2
    tm = max(tm, 8)
    tm = min(tm, _round_up(M, 8))                  # no bigger than (row-padded) M
    # Keep >= 2 grid steps so the "parallel" M axis can occupy both of v7x's
    # TensorCores (grid_m == 1 leaves a core idle); harmless on v5e/v6e.
    if M > 8 and pl.cdiv(M, tm) < 2:
        tm = max(8, _round_up(pl.cdiv(M, 2), 8))
    return tm


def patch_embed_forward(x, conv_w, conv_b, ln_g, ln_b, patch_size, *,
                        eps=1e-5, compute_dtype=jnp.bfloat16, out_dtype=None,
                        tm=None):
    """x: [B, C, H, W] (NCHW). Returns ([B, N, E], (H//ph, W//pw))."""
    B, C, H, W = x.shape
    ph, pw = patch_size
    assert H % ph == 0 and W % pw == 0
    Hp, Wp = H // ph, W // pw
    N = Hp * Wp
    E = conv_w.shape[0]
    K = C * ph * pw
    M = B * N

    # Module semantics echo the input dtype; pass out_dtype=jnp.bfloat16 when
    # the downstream consumer accepts bf16 (halves [M,E] writeback + VMEM).
    out_dtype = x.dtype if out_dtype is None else out_dtype
    in_bytes = jnp.dtype(compute_dtype).itemsize
    out_bytes = jnp.dtype(out_dtype).itemsize

    # Generation-aware VMEM budget (v5e/v6e: 128 MiB, v7x: 64 MiB per TC).
    vmem_cap = _vmem_capacity_bytes()
    if tm is None:
        tm = _choose_row_tile(M, K, E, in_bytes, out_bytes,
                              vmem_budget_bytes=int(vmem_cap * 0.75))
    grid_m = pl.cdiv(M, tm)

    # Patch extraction: cast to the compute dtype FIRST so the rearrangement
    # fusion moves half the bytes.  Flatten order (C, ph, pw) matches Conv2d
    # weight flattening.  NOTE: no explicit padding of the ragged last tile —
    # Pallas masks the out-of-bounds rows of the final block and rows are
    # independent, so no junk leaks into valid outputs.
    # TODO(synk): fold this rearrangement into the kernel's DMA (6-D BlockSpec
    # over the [B,C,Hp,ph,Wp,pw] view + in-kernel relayout) to remove the
    # extra HBM round trip of the dominant operand.
    xc = x.astype(compute_dtype)
    xp = jnp.transpose(xc.reshape(B, C, Hp, ph, Wp, pw),
                       (0, 2, 4, 1, 3, 5)).reshape(M, K)

    # Conv weight [E, C, ph, pw] -> [K, E] in the matching (C, ph, pw) order.
    w2d = conv_w.reshape(E, K).T.astype(compute_dtype)
    b2d = conv_b.reshape(1, E).astype(jnp.float32)
    g2d = ln_g.reshape(1, E).astype(jnp.float32)
    beta2d = ln_b.reshape(1, E).astype(jnp.float32)

    # Scoped-VMEM limit: enough for the chosen tile with 2-deep pipelining,
    # capped below the physical per-core capacity.
    vmem_need = _vmem_need_bytes(tm, K, E, in_bytes, out_bytes)
    vmem_limit = int(min(max(int(vmem_need * 1.25), 32 * 1024 * 1024),
                         int(vmem_cap * 0.9)))

    flops = 2 * M * K * E
    bytes_accessed = (M * K * in_bytes + K * E * in_bytes + 3 * E * 4
                      + M * E * out_bytes)

    kernel = functools.partial(_patch_embed_kernel, eps=eps, inv_e=1.0 / E)
    out = pl.pallas_call(
        kernel,
        out_shape=jax.ShapeDtypeStruct((M, E), out_dtype),
        grid_spec=pltpu.PrefetchScalarGridSpec(
            num_scalar_prefetch=0,
            grid=(grid_m,),
            in_specs=[
                pl.BlockSpec((tm, K), lambda i: (i, 0)),
                # Grid-invariant operands (constant index_map -> fetched once).
                pl.BlockSpec((K, E), lambda i: (0, 0)),
                pl.BlockSpec((1, E), lambda i: (0, 0)),
                pl.BlockSpec((1, E), lambda i: (0, 0)),
                pl.BlockSpec((1, E), lambda i: (0, 0)),
            ],
            out_specs=pl.BlockSpec((tm, E), lambda i: (i, 0)),
        ),
        compiler_params=pltpu.CompilerParams(
            dimension_semantics=("parallel",),
            vmem_limit_bytes=vmem_limit),
        cost_estimate=pl.CostEstimate(flops=flops, transcendentals=0,
                                      bytes_accessed=bytes_accessed),
    )(xp, w2d, b2d, g2d, beta2d)

    return out.reshape(B, N, E), (Hp, Wp)


def patch_embed_reference(x, conv_w, conv_b, ln_g, ln_b, patch_size, *, eps=1e-5):
    """Pure-JAX f32 reference (strided conv + LayerNorm), PyTorch semantics."""
    B, C, H, W = x.shape
    ph, pw = patch_size
    y = lax.conv_general_dilated(
        x, conv_w, window_strides=(ph, pw), padding="VALID",
        dimension_numbers=("NCHW", "OIHW", "NCHW"))
    y = y + conv_b.reshape(1, -1, 1, 1)
    B, E, Hp, Wp = y.shape
    y = y.reshape(B, E, Hp * Wp).transpose(0, 2, 1)  # [B, N, E]
    mean = jnp.mean(y, axis=-1, keepdims=True)
    var = jnp.mean((y - mean) ** 2, axis=-1, keepdims=True)
    y = (y - mean) / jnp.sqrt(var + eps)
    return y * ln_g + ln_b, (Hp, Wp)


def patch_embed_reference_matched(x, conv_w, conv_b, ln_g, ln_b, patch_size, *,
                                  eps=1e-5, compute_dtype=jnp.bfloat16):
    """Pure-JAX reference using the same bf16-operand matmul as the kernel."""
    B, C, H, W = x.shape
    ph, pw = patch_size
    Hp, Wp = H // ph, W // pw
    E = conv_w.shape[0]
    K = C * ph * pw
    xp = x.astype(compute_dtype).reshape(B, C, Hp, ph, Wp, pw)
    xp = jnp.transpose(xp, (0, 2, 4, 1, 3, 5)).reshape(B * Hp * Wp, K)
    w2d = conv_w.reshape(E, K).T.astype(compute_dtype)
    y = jnp.dot(xp, w2d, preferred_element_type=jnp.float32) + conv_b[None, :]
    mean = jnp.mean(y, axis=-1, keepdims=True)
    var = jnp.mean((y - mean) ** 2, axis=-1, keepdims=True)
    y = (y - mean) / jnp.sqrt(var + eps)
    y = y * ln_g + ln_b
    return y.reshape(B, Hp * Wp, E).astype(x.dtype), (Hp, Wp)


def _run_and_check(B, C, H, W, ph, pw, E, seed=0):
    key = jax.random.PRNGKey(seed)
    k1, k2, k3, k4, k5 = jax.random.split(key, 5)
    x = jax.random.normal(k1, (B, C, H, W), dtype=jnp.float32)
    conv_w = jax.random.normal(k2, (E, C, ph, pw), dtype=jnp.float32) * 0.05
    conv_b = jax.random.normal(k3, (E,), dtype=jnp.float32) * 0.05
    ln_g = 1.0 + 0.1 * jax.random.normal(k4, (E,), dtype=jnp.float32)
    ln_b = 0.1 * jax.random.normal(k5, (E,), dtype=jnp.float32)

    out, size = patch_embed_forward(x, conv_w, conv_b, ln_g, ln_b, (ph, pw))
    out = jax.block_until_ready(out)

    assert out.shape == (B, (H // ph) * (W // pw), E), out.shape
    assert size == (H // ph, W // pw), size

    # Tight check vs a reference that uses the same bf16 MXU operands.
    ref_m, _ = patch_embed_reference_matched(x, conv_w, conv_b, ln_g, ln_b, (ph, pw))
    err_m = float(jnp.max(jnp.abs(out.astype(jnp.float32) - ref_m.astype(jnp.float32))))
    assert err_m < 2e-3, f"matched-reference mismatch: {err_m}"

    # Looser check vs the exact f32 conv+LN reference (bf16 operand rounding).
    ref, ref_size = patch_embed_reference(x, conv_w, conv_b, ln_g, ln_b, (ph, pw))
    assert ref_size == size
    err = float(jnp.max(jnp.abs(out.astype(jnp.float32) - ref)))
    assert err < 5e-2, f"exact-reference mismatch: {err}"


if __name__ == "__main__":
    # Small config consistent with the module: img=16, patch=4, in_chans=4, embed=32.
    _run_and_check(B=2, C=4, H=16, W=16, ph=4, pw=4, E=32, seed=0)
    # Ragged-tile config (M not divisible by the row tile) to exercise the
    # pad-free masked last block.
    _run_and_check(B=2, C=4, H=24, W=24, ph=4, pw=4, E=32, seed=1)
    print("KERNEL_OK")
</pallas_src>

<mosaic_0001>
module attributes {stable_mosaic.version = 11 : i64} {
  func.func @_patch_embed_kernel(%arg0: i32, %arg1: memref<16x64xbf16, #tpu.memory_space<vmem>>, %arg2: memref<64x32xbf16, #tpu.memory_space<vmem>>, %arg3: memref<1x32xf32, #tpu.memory_space<vmem>>, %arg4: memref<1x32xf32, #tpu.memory_space<vmem>>, %arg5: memref<1x32xf32, #tpu.memory_space<vmem>>, %arg6: memref<16x32xf32, #tpu.memory_space<vmem>>) attributes {dimension_semantics = [#tpu.dimension_semantics<parallel>], iteration_bounds = array<i64: 2>, scalar_prefetch = 0 : i64, scratch_operands = 0 : i64, tpu.core_type = #tpu.core_type<tc>, window_params = [{transform_indices = @transform_0, window_bounds = array<i64: 16, 64>}, {pipeline_mode = #tpu.pipeline_mode<synchronous>, transform_indices = @transform_1, window_bounds = array<i64: 64, 32>}, {pipeline_mode = #tpu.pipeline_mode<synchronous>, transform_indices = @transform_2, window_bounds = array<i64: 1, 32>}, {pipeline_mode = #tpu.pipeline_mode<synchronous>, transform_indices = @transform_3, window_bounds = array<i64: 1, 32>}, {pipeline_mode = #tpu.pipeline_mode<synchronous>, transform_indices = @transform_4, window_bounds = array<i64: 1, 32>}, {transform_indices = @transform_5, window_bounds = array<i64: 16, 32>}]} {
    %c0 = arith.constant 0 : index
    %c0_0 = arith.constant 0 : index
    %0 = vector.load %arg1[%c0, %c0_0] : memref<16x64xbf16, #tpu.memory_space<vmem>>, vector<16x64xbf16>
    %c0_1 = arith.constant 0 : index
    %c0_2 = arith.constant 0 : index
    %1 = vector.load %arg2[%c0_1, %c0_2] : memref<64x32xbf16, #tpu.memory_space<vmem>>, vector<64x32xbf16>
    %cst = arith.constant dense<0.000000e+00> : vector<16x32xf32>
    %2 = tpu.matmul %0, %1, %cst {dimension_numbers = #tpu.dot_dimension_numbers<[1], [0], [0], [1], [0, 0, 1, 1], [], []>} : vector<16x64xbf16>, vector<64x32xbf16>, vector<16x32xf32> -> vector<16x32xf32>
    %c0_3 = arith.constant 0 : index
    %c0_4 = arith.constant 0 : index
    %3 = vector.load %arg3[%c0_3, %c0_4] : memref<1x32xf32, #tpu.memory_space<vmem>>, vector<1x32xf32>
    %4 = vector.broadcast %3 : vector<1x32xf32> to vector<16x32xf32>
    %5 = arith.addf %2, %4 : vector<16x32xf32>
    %cst_5 = arith.constant dense<0.000000e+00> : vector<16xf32>
    %6 = vector.multi_reduction <add>, %5, %cst_5 [1] : vector<16x32xf32> to vector<16xf32>
    %7 = vector.shape_cast %6 : vector<16xf32> to vector<16x1xf32>
    %8 = arith.mulf %5, %5 : vector<16x32xf32>
    %cst_6 = arith.constant dense<0.000000e+00> : vector<16xf32>
    %9 = vector.multi_reduction <add>, %8, %cst_6 [1] : vector<16x32xf32> to vector<16xf32>
    %10 = vector.shape_cast %9 : vector<16xf32> to vector<16x1xf32>
    %cst_7 = arith.constant 3.125000e-02 : f32
    %11 = vector.broadcast %cst_7 : f32 to vector<16x1xf32>
    %12 = arith.mulf %7, %11 : vector<16x1xf32>
    %cst_8 = arith.constant 3.125000e-02 : f32
    %13 = vector.broadcast %cst_8 : f32 to vector<16x1xf32>
    %14 = arith.mulf %10, %13 : vector<16x1xf32>
    %15 = arith.mulf %12, %12 : vector<16x1xf32>
    %16 = arith.subf %14, %15 : vector<16x1xf32>
    %cst_9 = arith.constant 0.000000e+00 : f32
    %17 = vector.broadcast %cst_9 : f32 to vector<16x1xf32>
    %18 = arith.maximumf %16, %17 : vector<16x1xf32>
    %cst_10 = arith.constant 9.99999974E-6 : f32
    %19 = vector.broadcast %cst_10 : f32 to vector<16x1xf32>
    %20 = arith.addf %18, %19 : vector<16x1xf32>
    %21 = math.rsqrt %20 : vector<16x1xf32>
    %22 = vector.broadcast %12 : vector<16x1xf32> to vector<16x32xf32>
    %23 = arith.subf %5, %22 : vector<16x32xf32>
    %24 = vector.broadcast %21 : vector<16x1xf32> to vector<16x32xf32>
    %25 = arith.mulf %23, %24 : vector<16x32xf32>
    %c0_11 = arith.constant 0 : index
    %c0_12 = arith.constant 0 : index
    %26 = vector.load %arg4[%c0_11, %c0_12] : memref<1x32xf32, #tpu.memory_space<vmem>>, vector<1x32xf32>
    %27 = vector.broadcast %26 : vector<1x32xf32> to vector<16x32xf32>
    %28 = arith.mulf %25, %27 : vector<16x32xf32>
    %c0_13 = arith.constant 0 : index
    %c0_14 = arith.constant 0 : index
    %29 = vector.load %arg5[%c0_13, %c0_14] : memref<1x32xf32, #tpu.memory_space<vmem>>, vector<1x32xf32>
    %30 = vector.broadcast %29 : vector<1x32xf32> to vector<16x32xf32>
    %31 = arith.addf %28, %30 : vector<16x32xf32>
    %c0_15 = arith.constant 0 : index
    %c0_16 = arith.constant 0 : index
    %32 = vector.load %arg6[%c0_15, %c0_16] : memref<16x32xf32, #tpu.memory_space<vmem>>, vector<16x32xf32>
    tpu.vector_store %arg6[%c0_15, %c0_16], %31 {strides = array<i32>} : memref<16x32xf32, #tpu.memory_space<vmem>>, vector<16x32xf32>,
    return
  }
  func.func @transform_0(%arg0: i32) -> (i32, i32) {
    %c0_i32 = arith.constant 0 : i32
    %c0_i32_0 = arith.constant 0 : i32
    return %arg0, %c0_i32 : i32, i32
  }
  func.func @transform_1(%arg0: i32) -> (i32, i32) {
    %c0_i32 = arith.constant 0 : i32
    %c0_i32_0 = arith.constant 0 : i32
    %c0_i32_1 = arith.constant 0 : i32
    return %c0_i32, %c0_i32_0 : i32, i32
  }
  func.func @transform_2(%arg0: i32) -> (i32, i32) {
    %c0_i32 = arith.constant 0 : i32
    %c0_i32_0 = arith.constant 0 : i32
    %c0_i32_1 = arith.constant 0 : i32
    return %c0_i32, %c0_i32_0 : i32, i32
  }
  func.func @transform_3(%arg0: i32) -> (i32, i32) {
    %c0_i32 = arith.constant 0 : i32
    %c0_i32_0 = arith.constant 0 : i32
    %c0_i32_1 = arith.constant 0 : i32
    return %c0_i32, %c0_i32_0 : i32, i32
  }
  func.func @transform_4(%arg0: i32) -> (i32, i32) {
    %c0_i32 = arith.constant 0 : i32
    %c0_i32_0 = arith.constant 0 : i32
    %c0_i32_1 = arith.constant 0 : i32
    return %c0_i32, %c0_i32_0 : i32, i32
  }
  func.func @transform_5(%arg0: i32) -> (i32, i32) {
    %c0_i32 = arith.constant 0 : i32
    %c0_i32_0 = arith.constant 0 : i32
    return %arg0, %c0_i32 : i32, i32
  }
}

</mosaic_0001>

<bundles_post_ra>
// kernel: tpu_custom_call.1
= control target key start
LH: loop header
LB: loop body
LE: loop exit
PB: predicated region body
PF: predicated region fallthrough
CT: control target
= control target key end

     0   :  { %10 = vsyncpa [#allocation3], 0  ;;  %s729_s0 = inlined_call_operand.vmem [shape: bf16[32,64], index: 0, kind: input, shape index: {}]   ;;  %s730_s1 = inlined_call_operand.vmem [shape: bf16[64,32], index: 1, kind: input, shape index: {}]   ;;  %s731_s2 = inlined_call_operand.vmem [shape: f32[1,32], index: 2, kind: input, shape index: {}]   ;;  %s732_s3 = inlined_call_operand.vmem [shape: f32[1,32], index: 3, kind: input, shape index: {}]   ;;  %s733_s4 = inlined_call_operand.vmem [shape: f32[1,32], index: 4, kind: input, shape index: {}]   ;;  %s734_s5 = inlined_call_operand.hbm [shape: f32[32,32], index: 5, kind: output, shape index: {}]  }
   0x1   :  { %12 = vsyncpa [#allocation3 + $0x1], 0  ;;  %s614_s18 = smov 0   ;;  %s616_s19 = smov 0  }
   0x2   :  { %s618_s20 = smov 0   ;;  %s620_s21 = smov 0  }
   0x3 LB: > { %s635_s22 = sadd.s32 4294967295, %s580_s21   ;;  %s431_s23 = sadd.s32 4294967294, %s580_s21   ;;  %s580_s21 = sphi %s620_s21, %s740_s21   ;;  %s576_s20 = sphi %s618_s20, %s739_s20   ;;  %s572_s19 = sphi %s616_s19, %s738_s19   ;;  %s568_s18 = sphi %s614_s18, %s737_s18  }
   0x4   : > { %s639_s24 = sadd.s32 1, %s580_s21   ;;  %s135_s25 = sadd.s32 1, %s576_s20 }
   0x5   : > { %s132_s26 = ssub.s32 %s580_s21, %s639_s24  ;;  %p145_p0 = scmp.ne.s32.totalorder %s576_s20, %s572_s19 }
   0x6   : > { %p133_p1 = scmp.eq.s32.totalorder %s132_s26, 0  ;;  %p146_p2 = scmp.eq.s32.totalorder %s635_s22, 1 }
   0x7   : > { %p151_p3 = scmp.ne.s32.totalorder %s572_s19, %s568_s18  ;;  %p152_p4 = scmp.eq.s32.totalorder %s431_s23, 1 }
   0x8   : > { %s650_s27 = scalar_select %p133_p1, %s576_s20, %s135_s25  }
   0x9   : > { %p652_p5 = por %p146_p2, %p145_p0  ;;  %p656_p6 = por %p152_p4, %p151_p3 }
   0xa   : > { %p434_p7 = scmp.ge.s32.totalorder %s580_s21, 1  ;;  %p191_p8 = scmp.lt.s32.totalorder %s580_s21, 3 }
   0xc   : > { %p192_p9 = pnand %p434_p7, %p191_p8 }
   0xd   : > { %s436_s7 = sshll.u32 (!%p192_p9), %s635_s22, 1  ;;  %s216_s26 = sand.u32 (!%p192_p9), 1, %s572_s19  }
   0xe   : > { %195 = sbr.rel (%p192_p9) target bundleno = 326 (0x146), region = 40  ;;  %p220_p10 = scmp.lt.s32.totalorder (!%p192_p9), %s436_s7, 3 }
   0xf   : > { %s435_s9 = sshll.u32 (!%p192_p9), %s216_s26, 4  ;;  %s469_s10 = sshll.u32 (!%p192_p9), %s635_s22, 4 }
  0x10   : > { %s218_s11 = scalar_lea.vmem (!%p192_p9), [#allocation2], %s435_s9  ;;  %s365_s14 = scalar_lea.hbm (!%p192_p9), %s734_s5, %s469_s10 }
  0x11   : > { %s366_s15 = sshll.u32 (!%p192_p9), %s218_s11, 4  ;;  %s368_s22 = sshll.u32 (!%p192_p9), %s365_s14, 4  ;;  %s367_s15 = int_to_ptr.vmem [resolvable:$true] %s366_s15  ;;  %s369_s22 = int_to_ptr.hbm [resolvable:$true] %s368_s22 }
  0x12   : > { %s354_s16 = scalar_lea.sflag (!%p192_p9), [#allocation3], %s216_s26  ;;  %s538_s6 = scalar_lea.hbm (!%p192_p9), %s734_s5, 32 }
  0x13   : > { %v468_v0 = vld [vmem:[%s730_s1 + $0x18] sm:$0xff]  ;;  %v467_v1 = vld [vmem:[%s730_s1 + $0x10] sm:$0xff]  ;;  %s742_s7 = smov (!%p220_p10, %s436_s7), 3  ;;  %v466_v2 = vld [vmem:[%s730_s1 + $0x8] sm:$0xff]  ;;  %vm270_vm0 = vcmask 523264   ;;  %vm288_vm1 = vcmask 261120  }
  0x14   : > { %278 = vmatpush.bf16.msra.mxu0 %v468_v0  ;;  %s437_s12 = sshll.u32 %s742_s7, 2  ;;  %v465_v3 = vld [vmem:[%s730_s1] sm:$0xff] }
  0x15   : > { %s223_s17 = scalar_lea.vmem %s729_s0, %s437_s12  ;;  %v511_v5 = vld [vmem:[%s731_s2] ss:$0 sm:$0xff] }
  0x16   : > { %v464_v4 = vld [vmem:[%s223_s17] sm:$0xff]  ;;  %s532_s17 = sshra.s32 %s369_s22, 4  ;;  %s533_s17 = int_to_ptr.hbm [resolvable:$true] %s532_s17 }
  0x17   : > { %v512_v40 = vld [vmem:[%s732_s3] ss:$0 sm:$0xff]  ;;  %s534_s23 = scalar_lea.hbm %s533_s17, 16  ;;  %p539_p0 = scmp.lt.s32.totalorder %s533_s17, %s734_s5 }
  0x18   : > { %279 = vmatpush.bf16.msra.mxu0 %v467_v1  ;;  %v513_v44 = vld [vmem:[%s733_s4] ss:$0 sm:$0xff]  ;;  %p535_p11 = scmp.ne.s32.totalorder %s533_s17, %s534_s23  ;;  %p540_p1 = scmp.lt.s32.totalorder %s538_s6, %s534_s23 }
  0x1a   : > { %p536_p12 = pnand %p535_p11, %p652_p5  ;;  %p541_p2 = por %p540_p1, %p539_p0 }
  0x1c   : > { %280 = vmatpush.bf16.msra.mxu0 %v466_v2  ;;  %p537_p13 = pneg %p536_p12 }
  0x1e   : > { %p542_p3 = pnand %p541_p2, %p537_p13 }
  0x20   : > { %281 = vmatpush.bf16.msra.mxu0 %v465_v3 }
  0x23   : > { %458 = vmatmul.msk.bf16.vlgmr.msra.gmra.mxu0 %vm270_vm0, %v464_v4 }
  0xa0   : > { %v283_v6 = vpop.f32.mrf.mxu0 }
  0xa1   : > { %v284_v7 = vadd.f32 %v511_v5, %v283_v6 }
  0xa3   : > { %v289_v8 = vsel %vm288_vm1, %v284_v7, 0.0  ;;  %v295_v9 = vmul.f32 %v284_v7, %v284_v7 }
  0xa4   : > { %290 = vadd.xlane.f32.xlu0 %v289_v8 }
  0xa5   : > { %v297_v10 = vsel %vm288_vm1, %v295_v9, 0.0 }
  0xa6   : > { %298 = vadd.xlane.f32.xlu1 %v297_v10 }
  0xa8   : > { %v285_v11 = vpop.f32.mrf.mxu0 }
  0xa9   : > { %v286_v12 = vadd.f32 %v511_v5, %v285_v11 }
  0xab   : > { %v292_v13 = vsel %vm288_vm1, %v286_v12, 0.0  ;;  %v296_v14 = vmul.f32 %v286_v12, %v286_v12 }
  0xac   : > { %293 = vadd.xlane.f32.xlu0 %v292_v13 }
  0xad   : > { %v300_v15 = vsel %vm288_vm1, %v296_v14, 0.0 }
  0xae   : > { %301 = vadd.xlane.f32.xlu1 %v300_v15 }
 0x117   : > { %v291_v16 = vpop.xlane.xlu0 %290 }
 0x118   : > { %v303_v17 = vmul.f32 0.03125, %v291_v16 }
 0x119   : > { %v299_v18 = vpop.xlane.xlu1 %298 }
 0x11a   : > { %v307_v19 = vmul.f32 %v303_v17, %v303_v17  ;;  %v305_v20 = vmul.f32 0.03125, %v299_v18  ;;  %v335_v39 = vsub.f32 %v284_v7, %v303_v17 }
 0x11c   : > { %v309_v21 = vsub.f32 %v305_v20, %v307_v19 }
 0x11e   : > { %v311_v22 = vmax.f32 %v309_v21, 0.0 }
 0x11f   : > { %v294_v23 = vpop.xlane.xlu0 %293 }
 0x120   : > { %v313_v24 = vadd.f32 1e-05, %v311_v22  ;;  %v304_v25 = vmul.f32 0.03125, %v294_v23 }
 0x121   : > { %v302_v26 = vpop.xlane.xlu1 %301 }
 0x122   : > { %514 = vrsqrt.f32 %v313_v24  ;;  %v308_v27 = vmul.f32 %v304_v25, %v304_v25  ;;  %v306_v28 = vmul.f32 0.03125, %v302_v26  ;;  %vm321_vm3 = vweird.f32 %v313_v24 }
 0x123   : > { %v336_v51 = vsub.f32 %v286_v12, %v304_v25 }
 0x124   : > { %v310_v29 = vsub.f32 %v306_v28, %v308_v27 }
 0x126   : > { %v312_v30 = vmax.f32 %v310_v29, 0.0 }
 0x128   : > { %v515_v31 = vpop.eup %514  ;;  %v314_v33 = vadd.f32 1e-05, %v312_v30 }
 0x129   : > { %v316_v32 = vmul.f32 %v515_v31, %v313_v24  ;;  %vm322_vm2 = vweird.f32 %v515_v31 }
 0x12a   : > { %516 = vrsqrt.f32 %v314_v33  ;;  %vm323_vm4 = vmor %vm321_vm3, %vm322_vm2  ;;  %vm331_vm6 = vweird.f32 %v314_v33 }
 0x12b   : > { %v317_v34 = vmul.f32 %v515_v31, %v316_v32 }
 0x12d   : > { %v318_v35 = vmul.f32 0.5, %v317_v34 }
 0x12f   : > { %v319_v36 = vsub.f32 1.5, %v318_v35 }
 0x130   : > { %v517_v37 = vpop.eup %516 }
 0x131   : > { %v320_v38 = vmul.f32 %v515_v31, %v319_v36  ;;  %v326_v41 = vmul.f32 %v517_v37, %v314_v33  ;;  %vm332_vm5 = vweird.f32 %v517_v37 }
 0x132   : > { %vm333_vm7 = vmor %vm331_vm6, %vm332_vm5 }
 0x133   : > { %v324_v42 = vsel %vm323_vm4, %v515_v31, %v320_v38  ;;  %v327_v45 = vmul.f32 %v517_v37, %v326_v41 }
 0x134   : > { %v337_v43 = vmul.f32 %v335_v39, %v324_v42 }
 0x135   : > { %v328_v47 = vmul.f32 0.5, %v327_v45 }
 0x136   : > { %v343_v46 = vmul.f32 %v512_v40, %v337_v43 }
 0x137   : > { %v329_v48 = vsub.f32 1.5, %v328_v47 }
 0x138   : > { %v349_v49 = vadd.f32 %v513_v44, %v343_v46 }
 0x139   : > { %v330_v50 = vmul.f32 %v517_v37, %v329_v48 }
 0x13a   : > { %351 = vst.msk [vmem:[%s218_s11] sm:$0xff] %vm288_vm1, %v349_v49 }
 0x13b   : > { %v334_v52 = vsel %vm333_vm7, %v517_v37, %v330_v50 }
 0x13c   : > { %v338_v53 = vmul.f32 %v336_v51, %v334_v52 }
 0x13e   : > { %v344_v54 = vmul.f32 %v512_v40, %v338_v53 }
 0x140   : > { %v350_v55 = vadd.f32 %v513_v44, %v344_v54 }
 0x142   : > { %352 = vst.msk [vmem:[%s218_s11 + $0x8] sm:$0xff] %vm288_vm1, %v350_v55 }
 0x143   : > { %545 = shalt.err (!%p542_p3)
}
 0x144   : > { %s582_s26 = smov 128   ;;  %s583_s9 = smov 8  }
 0x145   : > { %470 = dma.vmem_to_hbm [thread:$0]  (%p652_p5), %s367_s15, 256, %s369_s22, %s354_s16, %s582_s26, %s582_s26, %s583_s9  }
 0x146 PF: > { %p476_p4 = scmp.ge.s32.totalorder %s580_s21, 2  ;;  %s383_s10 = sand.u32 1, %s568_s18  }
 0x147   : > { %s384_s11 = scalar_lea.sflag [#allocation3], %s383_s10 }
 0x148   : > { %p473_p7 = pnand %p476_p4, %p656_p6 }
 0x14a   : > { %p474_p8 = pneg %p473_p7 }
 0x14c   : > { %563 = dma.done.wait (%p474_p8), %s384_s11, 256  }
 0x14d   : > { %565 = vsyncadd (%p474_p8), %s384_s11, 4294967040  ;;  %p15_p9 = scmp.ge.s32.totalorder %s639_s24, 4   ;;  %s737_s18 = smov %s572_s19 }
 0x14e   : > { %s738_s19 = smov %s576_s20  ;;  %s739_s20 = smov %s650_s27 }
 0x14f   : > { %s740_s21 = smov %s639_s24  ;;  %17 = sbr.rel (!%p15_p9) target bundleno = 3 (0x3), region = 75 }
 0x154   :  { %390 = vsyncpa [#allocation3], 1 }
 0x155   :  { %392 = vsyncpa [#allocation3 + $0x1], 1 }

</bundles_post_ra>
